<compile_context>
chip_gen: v7x
topology: tpu7x:2x2x1
jax: 0.10.0
libtpu: 0.0.40
codegen_flags: <defaults>
</compile_context>

<pallas_src>
import functools
import math

import jax
import jax.numpy as jnp
from jax.experimental import pallas as pl
from jax.experimental.pallas import tpu as pltpu


# Below this much total traffic a standalone pallas_call is pure launch overhead.
_PALLAS_MIN_BYTES = 1 << 20          # ~1 MiB
_TARGET_BLOCK_BYTES = 2 << 20        # ~2 MiB per big operand per grid step
_LANE = 128
_MAX_BN = 2048


def _ctx_sample_kernel(mu_ref, scale_ref, eps_ref, z_ref, *, reps):
    """Reparameterized Gaussian sample: z = mu + scale * eps.

    mu/eps/z blocks are (bm, bn) in the model dtype; the scale block is (C, bn) f32
    and is replicated to bm rows in-VMEM (cheap: this kernel is HBM-bandwidth bound).
    """
    mu = mu_ref[...].astype(jnp.float32)
    eps = eps_ref[...].astype(jnp.float32)
    scale = scale_ref[...]
    if reps > 1:
        scale = jnp.tile(scale, (reps, 1))
    z_ref[...] = (mu + scale * eps).astype(z_ref.dtype)


def _ctx_sample_pallas(mu2, eps2, scale, C):
    """mu2/eps2: (R, L) slabs (R = MB*C, L = H*W); scale: (C, L) f32. Returns (R, L)."""
    R, L = mu2.shape
    out_dtype = mu2.dtype
    min_item = min(jnp.dtype(mu2.dtype).itemsize,
                   jnp.dtype(eps2.dtype).itemsize,
                   jnp.dtype(out_dtype).itemsize)
    max_item = max(jnp.dtype(mu2.dtype).itemsize,
                   jnp.dtype(eps2.dtype).itemsize,
                   jnp.dtype(out_dtype).itemsize)

    # Sublane packing: f32 -> 8 rows/vreg, bf16 -> 16, int8/fp8 -> 32.
    sub = max(8, 32 // min_item)
    # Rows per repeat of the per-channel scale, rounded to a full sublane group.
    period = math.lcm(C, sub)

    # --- lane (column) block: multiple of 128, or the full row width ---------------
    if L % _LANE == 0:
        bn = min(L, _MAX_BN)
    else:
        # Full-width block (legal: block dim == array dim); masked lane stores, but no
        # wrapper-side jnp.pad / slice HBM copies for odd H*W.
        bn = L
    # Keep even the minimum-legal block inside a sane VMEM budget for odd/large C.
    while period * bn * max_item > 4 * _TARGET_BLOCK_BYTES and bn % (2 * _LANE) == 0:
        bn //= 2
    grid_n = (L + bn - 1) // bn

    # --- row block: multiple of lcm(C, sublane), sized for ~_TARGET_BLOCK_BYTES ----
    bm = max(period, (_TARGET_BLOCK_BYTES // (bn * max_item)) // period * period)
    if bm >= R:
        bm = R                        # single full-height block (always legal)
    if bm == R and grid_n == 1 and R >= 2 * period:
        # v7x megacore: make sure there are >=2 blocks to shard across the 2 TCs.
        bm = ((R // 2 + period - 1) // period) * period
    grid_m = (R + bm - 1) // bm
    reps = bm // C                    # bm is a multiple of C in every branch (R = MB*C)

    big_spec = pl.BlockSpec((bm, bn), lambda jc, ir: (ir, jc))
    # Scale depends only on the (outer) column index -> fetched once per column tile.
    scale_spec = pl.BlockSpec((C, bn), lambda jc, ir: (0, jc))

    block_bytes = (bm * bn * (jnp.dtype(mu2.dtype).itemsize
                              + jnp.dtype(eps2.dtype).itemsize
                              + jnp.dtype(out_dtype).itemsize)
                   + C * bn * 4)
    vmem_limit = int(min(48 << 20, max(4 << 20, 2 * block_bytes + (2 << 20))))

    cost = pl.CostEstimate(
        flops=2 * R * L,
        transcendentals=0,
        bytes_accessed=(R * L * (jnp.dtype(mu2.dtype).itemsize
                                 + jnp.dtype(eps2.dtype).itemsize
                                 + jnp.dtype(out_dtype).itemsize)
                        + C * L * 4),
    )

    return pl.pallas_call(
        functools.partial(_ctx_sample_kernel, reps=reps),
        out_shape=jax.ShapeDtypeStruct((R, L), out_dtype),
        grid=(grid_n, grid_m),                 # columns outer, rows inner
        in_specs=[big_spec, scale_spec, big_spec],
        out_specs=big_spec,
        compiler_params=pltpu.CompilerParams(
            dimension_semantics=("parallel", "parallel"),
            vmem_limit_bytes=vmem_limit,
        ),
        cost_estimate=cost,
    )(mu2, scale, eps2)


def ctx_decoder_block_forward(ctx_val, s_dec, q_logvar, eps, t=1.0, use_pallas=None):
    """JAX/Pallas equivalent of _CtxDecoderBlock.forward (mode='train', ctx_val given,
    ctx_prior is NOT a DiffusionPrior).

    ctx_val:  (MB, C, H, W)       -- NCHW, model dtype (f32 or bf16)
    s_dec:    anything, passed through untouched
    q_logvar: (1, C, H, W) float  -- the nn.Parameter (init = -6 * ones)
    eps:      (MB, C, H, W)       -- standard-normal noise for the reparam sample
    t:        temperature (float)
    use_pallas: None = auto (size threshold), True/False to force a path.

    Returns (p_dist, q_dist, z_sample, s_dec), q_dist = (mean, logvar) tensors.
    """
    MB, C, H, W = ctx_val.shape
    L = H * W
    R = MB * C
    f32 = jnp.float32
    out_dtype = ctx_val.dtype

    # get_logvar(): clamp the tiny (1,C,H,W) parameter (plain XLA, 1/MB of the data),
    # and fold temperature + exp into a per-(channel, position) sampling scale.
    lv_c = jnp.clip(q_logvar.astype(f32), -12.0, -5.0)                   # (1,C,H,W)
    scale = (jnp.asarray(t, f32) * jnp.exp(0.5 * lv_c)).reshape(C, L)    # (C,L), tiny

    total_bytes = 3 * R * L * jnp.dtype(out_dtype).itemsize
    if use_pallas is None:
        use_pallas = total_bytes >= _PALLAS_MIN_BYTES

    if use_pallas:
        mu2 = ctx_val.reshape(R, L)     # metadata-only reshape, native dtype
        eps2 = eps.reshape(R, L)
        z_sample = _ctx_sample_pallas(mu2, eps2, scale, C).reshape(MB, C, H, W)
    else:
        # Tiny op: a bare FMA that XLA fuses with the surrounding decoder for free.
        z_sample = (ctx_val.astype(f32)
                    + scale.reshape(1, C, H, W) * eps.astype(f32)).astype(out_dtype)

    # q_dist: mean is ctx_val itself (no copy); logvar is the clamped parameter
    # broadcast lazily over the batch (== q_logvar.repeat(MB,1,1,1) in PyTorch).
    q_dist = (ctx_val, jnp.broadcast_to(lv_c, (MB, C, H, W)))

    # TODO(synk): p_dist = self.ctx_prior is an nn.Module object; the DiffusionPrior
    # log_prob / eval_is_ll / sample branches are external modules and not translated.
    p_dist = None
    return p_dist, q_dist, z_sample, s_dec


if __name__ == "__main__":
    key = jax.random.PRNGKey(0)
    MB, C, H, W = 2, 4, 16, 16          # ctx_size = [4, 16, 16]
    k1, k2, k3, k4, k5 = jax.random.split(key, 5)

    ctx_val = jax.random.normal(k1, (MB, C, H, W), dtype=jnp.float32)
    s_dec = jax.random.normal(k2, (MB, 8, H, W), dtype=jnp.float32)   # pass-through
    eps = jax.random.normal(k3, (MB, C, H, W), dtype=jnp.float32)
    # Deterministic parameter init: non-DiffusionPrior branch of __init__.
    q_logvar = jnp.ones((1, C, H, W), dtype=jnp.float32) * -6.0
    temperature = 0.7

    def ref_z(cv, lvp, e, tt):
        lv = jnp.clip(lvp.astype(jnp.float32), -12.0, -5.0)
        return cv.astype(jnp.float32) + tt * jnp.exp(0.5 * lv) * e.astype(jnp.float32)

    # 1) Default tiny shape: auto dispatch picks the fused plain-XLA path.
    _, (q_mean, q_lv), z_auto, s_out = ctx_decoder_block_forward(
        ctx_val, s_dec, q_logvar, eps, t=temperature)
    # 2) Same shape, forcing the Pallas kernel (bm == R full-row block, reps=2 tile).
    _, _, z_pallas, _ = ctx_decoder_block_forward(
        ctx_val, s_dec, q_logvar, eps, t=temperature, use_pallas=True)
    jax.block_until_ready((q_mean, q_lv, z_auto, z_pallas, s_out))

    z_expect = ref_z(ctx_val, q_logvar, eps, temperature)
    assert jnp.allclose(z_auto, z_expect, atol=1e-6, rtol=1e-6)
    assert jnp.allclose(z_pallas, z_expect, atol=1e-6, rtol=1e-6)
    assert jnp.allclose(q_mean, ctx_val)
    assert jnp.allclose(q_lv, jnp.broadcast_to(jnp.clip(q_logvar, -12.0, -5.0),
                                               (MB, C, H, W)))
    assert jnp.allclose(s_out, s_dec)

    # 3) Larger f32 shape: multi-block grid, partial last row block, in-kernel tiling.
    MB2, C2, H2, W2 = 10, 4, 32, 32
    c2 = jax.random.normal(k4, (MB2, C2, H2, W2), dtype=jnp.float32)
    e2 = jax.random.normal(k5, (MB2, C2, H2, W2), dtype=jnp.float32)
    lv2 = jnp.ones((1, C2, H2, W2), dtype=jnp.float32) * -6.0
    _, _, z2, _ = ctx_decoder_block_forward(c2, None, lv2, e2, t=1.3, use_pallas=True)
    jax.block_until_ready(z2)
    assert jnp.allclose(z2, ref_z(c2, lv2, e2, 1.3), atol=1e-6, rtol=1e-6)

    # 4) bf16 I/O: native-dtype blocks, f32 compute inside the kernel, bf16 output.
    c3 = ctx_val.astype(jnp.bfloat16)
    e3 = eps.astype(jnp.bfloat16)
    _, _, z3, _ = ctx_decoder_block_forward(
        c3, s_dec, q_logvar, e3, t=temperature, use_pallas=True)
    jax.block_until_ready(z3)
    assert z3.dtype == jnp.bfloat16
    z3_expect = ref_z(c3, q_logvar, e3, temperature)
    assert jnp.allclose(z3.astype(jnp.float32), z3_expect, atol=2e-2, rtol=2e-2)

    print("KERNEL_OK")
</pallas_src>

<mosaic_0001>
module attributes {stable_mosaic.version = 11 : i64} {
  func.func @_ctx_sample_kernel(%arg0: i32, %arg1: i32, %arg2: memref<8x256xf32, #tpu.memory_space<vmem>>, %arg3: memref<4x256xf32, #tpu.memory_space<vmem>>, %arg4: memref<8x256xf32, #tpu.memory_space<vmem>>, %arg5: memref<8x256xf32, #tpu.memory_space<vmem>>) attributes {dimension_semantics = [#tpu.dimension_semantics<parallel>, #tpu.dimension_semantics<parallel>], iteration_bounds = array<i64: 1, 1>, scalar_prefetch = 0 : i64, scratch_operands = 0 : i64, tpu.core_type = #tpu.core_type<tc>, window_params = [{transform_indices = @transform_0, window_bounds = array<i64: 8, 256>}, {transform_indices = @transform_1, window_bounds = array<i64: 4, 256>}, {transform_indices = @transform_2, window_bounds = array<i64: 8, 256>}, {transform_indices = @transform_3, window_bounds = array<i64: 8, 256>}]} {
    %c0 = arith.constant 0 : index
    %c0_0 = arith.constant 0 : index
    %0 = vector.load %arg2[%c0, %c0_0] : memref<8x256xf32, #tpu.memory_space<vmem>>, vector<8x256xf32>
    %c0_1 = arith.constant 0 : index
    %c0_2 = arith.constant 0 : index
    %1 = vector.load %arg4[%c0_1, %c0_2] : memref<8x256xf32, #tpu.memory_space<vmem>>, vector<8x256xf32>
    %c0_3 = arith.constant 0 : index
    %c0_4 = arith.constant 0 : index
    %2 = vector.load %arg3[%c0_3, %c0_4] : memref<4x256xf32, #tpu.memory_space<vmem>>, vector<4x256xf32>
    %3 = tpu.concatenate %2, %2 in 0 : vector<4x256xf32>, vector<4x256xf32> -> vector<8x256xf32>
    %4 = arith.mulf %3, %1 : vector<8x256xf32>
    %5 = arith.addf %0, %4 : vector<8x256xf32>
    %c0_5 = arith.constant 0 : index
    %c0_6 = arith.constant 0 : index
    %6 = vector.load %arg5[%c0_5, %c0_6] : memref<8x256xf32, #tpu.memory_space<vmem>>, vector<8x256xf32>
    tpu.vector_store %arg5[%c0_5, %c0_6], %5 {strides = array<i32>} : memref<8x256xf32, #tpu.memory_space<vmem>>, vector<8x256xf32>,
    return
  }
  func.func @transform_0(%arg0: i32, %arg1: i32) -> (i32, i32) {
    %c0_i32 = arith.constant 0 : i32
    return %arg1, %arg0 : i32, i32
  }
  func.func @transform_1(%arg0: i32, %arg1: i32) -> (i32, i32) {
    %c0_i32 = arith.constant 0 : i32
    %c0_i32_0 = arith.constant 0 : i32
    return %c0_i32, %arg0 : i32, i32
  }
  func.func @transform_2(%arg0: i32, %arg1: i32) -> (i32, i32) {
    %c0_i32 = arith.constant 0 : i32
    return %arg1, %arg0 : i32, i32
  }
  func.func @transform_3(%arg0: i32, %arg1: i32) -> (i32, i32) {
    %c0_i32 = arith.constant 0 : i32
    return %arg1, %arg0 : i32, i32
  }
}

</mosaic_0001>

<bundles_post_ra>
// kernel: tpu_custom_call.1
= control target key start
LH: loop header
LB: loop body
LE: loop exit
PB: predicated region body
PF: predicated region fallthrough
CT: control target
= control target key end

     0   :  { %8 = vsyncpa [#allocation3], 0  ;;  %s257_s0 = inlined_call_operand.hbm [shape: f32[8,256], index: 0, kind: input, shape index: {}]   ;;  %s258_s1 = inlined_call_operand.hbm [shape: f32[4,256], index: 1, kind: input, shape index: {}]   ;;  %s259_s2 = inlined_call_operand.hbm [shape: f32[8,256], index: 2, kind: input, shape index: {}]   ;;  %s260_s3 = inlined_call_operand.hbm [shape: f32[8,256], index: 3, kind: output, shape index: {}]  }
   0x1   :  { %9 = vsyncpa [#allocation6], 0 }
   0x2   :  { %10 = vsyncpa [#allocation4], 0  ;;  %s185_s12 = smov [#allocation5]   ;;  %s186_s14 = smov [#allocation2]  }
   0x3   :  { %s27_s13 = sshll.u32 %s185_s12, 4  ;;  %s17_s15 = sshll.u32 %s186_s14, 4  ;;  %s28_s13 = int_to_ptr.vmem [resolvable:$true] %s27_s13  ;;  %s18_s15 = int_to_ptr.vmem [resolvable:$true] %s17_s15 }
   0x4   :  { %s91_s18 = scalar_lea.hbm %s258_s1, 128 }
   0x5   :  { %p92_p0 = scmp.ne.s32.totalorder %s258_s1, %s91_s18  ;;  %p95_p1 = scmp.lt.u32.totalorder %s91_s18, %s258_s1 }
   0x7   :  { %p97_p2 = pnand %p95_p1, %p92_p0 }
   0x9   :  { %100 = shalt.err (!%p97_p2)
}
   0xa   :  { %s101_s23 = scalar_lea.vmem %s28_s13, 128  ;;  %p106_p4 = scmp.lt.s32.totalorder %s28_s13, %s28_s13 }
   0xb   :  { %p102_p3 = scmp.ne.s32.totalorder %s28_s13, %s101_s23  ;;  %p107_p5 = scmp.lt.s32.totalorder %s101_s23, %s101_s23 }
   0xd   :  { %p108_p6 = por %p107_p5, %p106_p4 }
   0xf   :  { %p109_p7 = pnand %p108_p6, %p102_p3 }
  0x11   :  { %112 = shalt.err (!%p109_p7)
}
  0x12   :  { %30 = dma.hbm_to_vmem [thread:$0]  %s258_s1, 128, %s28_s13, [#allocation6]  }
  0x13   :  { %s113_s28 = scalar_lea.hbm %s257_s0, 256 }
  0x14   :  { %p114_p8 = scmp.ne.s32.totalorder %s257_s0, %s113_s28  ;;  %p117_p9 = scmp.lt.u32.totalorder %s113_s28, %s257_s0 }
  0x16   :  { %p119_p10 = pnand %p117_p9, %p114_p8 }
  0x18   :  { %122 = shalt.err (!%p119_p10)
}
  0x19   :  { %s123_s6 = scalar_lea.vmem %s18_s15, 256  ;;  %p128_p12 = scmp.lt.s32.totalorder %s18_s15, %s18_s15 }
  0x1a   :  { %p124_p11 = scmp.ne.s32.totalorder %s18_s15, %s123_s6  ;;  %p129_p13 = scmp.lt.s32.totalorder %s123_s6, %s123_s6 }
  0x1c   :  { %p130_p0 = por %p129_p13, %p128_p12 }
  0x1e   :  { %p131_p1 = pnand %p130_p0, %p124_p11 }
  0x20   :  { %134 = shalt.err (!%p131_p1)
}
  0x21   :  { %20 = dma.hbm_to_vmem [thread:$0]  %s257_s0, 256, %s18_s15, [#allocation3]  }
  0x22   :  { %s187_s8 = smov [#allocation7]   ;;  %s135_s12 = scalar_lea.hbm %s259_s2, 256 }
  0x23   :  { %s37_s9 = sshll.u32 %s187_s8, 4  ;;  %p136_p2 = scmp.ne.s32.totalorder %s259_s2, %s135_s12  ;;  %s38_s9 = int_to_ptr.vmem [resolvable:$true] %s37_s9 }
  0x24   :  { %p139_p3 = scmp.lt.u32.totalorder %s135_s12, %s259_s2 }
  0x26   :  { %p141_p4 = pnand %p139_p3, %p136_p2 }
  0x28   :  { %144 = shalt.err (!%p141_p4)
}
  0x29   :  { %s145_s18 = scalar_lea.vmem %s38_s9, 256  ;;  %p150_p6 = scmp.lt.s32.totalorder %s38_s9, %s38_s9 }
  0x2a   :  { %p146_p5 = scmp.ne.s32.totalorder %s38_s9, %s145_s18  ;;  %p151_p7 = scmp.lt.s32.totalorder %s145_s18, %s145_s18 }
  0x2c   :  { %p152_p8 = por %p151_p7, %p150_p6 }
  0x2e   :  { %p153_p9 = pnand %p152_p8, %p146_p5 }
  0x30   :  { %156 = shalt.err (!%p153_p9)
}
  0x31   :  { %40 = dma.hbm_to_vmem [thread:$0]  %s259_s2, 256, %s38_s9, [#allocation6]  }
  0x32   :  { %179 = dma.done.wait [#allocation3], 256  }
  0x33   :  { %180 = vsyncadd [#allocation3], 4294967040 }
  0x34   :  { %181 = dma.done.wait [#allocation6], 384  }
  0x35   :  { %182 = vsyncadd [#allocation6], 4294966912  ;;  %v54_v0 = vld [vmem:[#allocation5] sm:$0xff]  ;;  %vm60_vm0 = vcmask 1043456   ;;  %v52_v1 = vld [vmem:[#allocation7] sm:$0xff]  ;;  %s188_s19 = smov [#allocation8]  }
  0x36   :  { %v58_v2 = vcombine.low %v54_v0, %v54_v0  ;;  %v53_v3 = vld [vmem:[#allocation7 + $0x8] sm:$0xff]  ;;  %v56_v4 = vcombine.high %v54_v0, %v54_v0  ;;  %v51_v7 = vld [vmem:[#allocation2 + $0x8] sm:$0xff]  ;;  %s75_s20 = sshll.u32 %s188_s19, 4  ;;  %s76_s20 = int_to_ptr.vmem [resolvable:$true] %s75_s20 }
  0x37   :  { %v50_v5 = vld [vmem:[#allocation2] sm:$0xff]  ;;  %s157_s2 = scalar_lea.vmem %s76_s20, 256  ;;  %p162_p11 = scmp.lt.s32.totalorder %s76_s20, %s76_s20 }
  0x38   :  { %v61_v6 = vsel %vm60_vm0, %v54_v0, %v58_v2  ;;  %v62_v8 = vsel %vm60_vm0, %v56_v4, %v54_v0  ;;  %p158_p10 = scmp.ne.s32.totalorder %s76_s20, %s157_s2  ;;  %p163_p12 = scmp.lt.s32.totalorder %s157_s2, %s157_s2 }
  0x39   :  { %v63_v9 = vmul.f32 %v61_v6, %v52_v1  ;;  %v64_v10 = vmul.f32 %v62_v8, %v53_v3 }
  0x3a   :  { %p164_p13 = por %p163_p12, %p162_p11 }
  0x3b   :  { %v65_v11 = vadd.f32 %v63_v9, %v50_v5  ;;  %v66_v12 = vadd.f32 %v64_v10, %v51_v7 }
  0x3c   :  { %p165_p0 = pnand %p164_p13, %p158_p10 }
  0x3d   :  { %67 = vst [vmem:[#allocation8] sm:$0xff] %v65_v11  ;;  %68 = vst [vmem:[#allocation8 + $0x8] sm:$0xff] %v66_v12 }
  0x3e   :  { %168 = shalt.err (!%p165_p0)
}
  0x3f   :  { %s169_s23 = scalar_lea.hbm %s260_s3, 256 }
  0x40   :  { %p170_p1 = scmp.ne.s32.totalorder %s260_s3, %s169_s23  ;;  %p173_p2 = scmp.lt.u32.totalorder %s169_s23, %s260_s3 }
  0x42   :  { %p175_p3 = pnand %p173_p2, %p170_p1 }
  0x44   :  { %178 = shalt.err (!%p175_p3)
}
  0x45   :  { %78 = dma.vmem_to_hbm [thread:$0]  %s76_s20, 256, %s260_s3, [#allocation4]  }
  0x46   :  { %183 = dma.done.wait [#allocation4], 256  }
  0x47   :  { %184 = vsyncadd [#allocation4], 4294967040 }
  0x48   :  { %82 = vsyncpa [#allocation3], 1 }
  0x49   :  { %83 = vsyncpa [#allocation6], 1 }
  0x4a   :  { %84 = vsyncpa [#allocation4], 1 }

</bundles_post_ra>
